<compile_context>
chip_gen: v6e
topology: v6e:2x2x1
jax: 0.10.0
libtpu: 0.0.40
codegen_flags: <defaults>
</compile_context>

<pallas_src>
import jax
import jax.numpy as jnp
from jax import lax
from jax.experimental import pallas as pl
from jax.experimental.pallas import tpu as pltpu


# ----------------------------------------------------------------------------
# Kernels
# ----------------------------------------------------------------------------
def _pose_quat_kernel_lane_dense(feat_ref, w_ref, b_ref, out_ref):
    """Lane-dense variant: out tile is (4, TB).

    Matmul stays weight-stationary (TB,D)@(D,4) on the MXU; only the small
    (TB,4) f32 result is transposed to (4,TB) so the normalize epilogue uses
    all 128 lanes of every vreg.
    """
    x = feat_ref[...]                     # (TB, D), native dtype (f32 / bf16)
    w = w_ref[...]                        # (D, 4),  same dtype
    b = b_ref[...]                        # (4, 1),  f32

    q = jnp.dot(x, w, preferred_element_type=jnp.float32)    # (TB, 4) f32, MXU
    qt = jnp.transpose(q) + b                                 # (4, TB) lane-dense

    # F.normalize(dim=-1): q * rsqrt(max(||q||^2, 1e-24)) == q / max(||q||, 1e-12)
    sumsq = jnp.sum(qt * qt, axis=0, keepdims=True)           # (1, TB) sublane reduce
    inv = lax.rsqrt(jnp.maximum(sumsq, 1e-24))                # EUP, 1 push / 128 rows
    out_ref[...] = (qt * inv).astype(out_ref.dtype)           # (4, TB) dense store


def _pose_quat_kernel_rows(feat_ref, w_ref, b_ref, out_ref):
    """Lane-sparse fallback: out tile is (TB, 4).  Used for small B / odd tiles."""
    x = feat_ref[...]                     # (TB, D)
    w = w_ref[...]                        # (D, 4)
    b = b_ref[...]                        # (1, 4) f32

    q = jnp.dot(x, w, preferred_element_type=jnp.float32) + b
    sumsq = jnp.sum(q * q, axis=-1, keepdims=True)
    inv = lax.rsqrt(jnp.maximum(sumsq, 1e-24))
    out_ref[...] = (q * inv).astype(out_ref.dtype)


# ----------------------------------------------------------------------------
# Tiling policy
# ----------------------------------------------------------------------------
def _vmem_policy():
    """Generation-aware VMEM policy.

    v5e/v6e: 128 MiB VMEM per TensorCore -> big tiles, raise the scoped-VMEM
    limit to 64 MiB (v5e's default is only 16 MiB).
    v7x: 64 MiB per TensorCore -> keep the double-buffered tile budget at
    24 MiB and the limit at 32 MiB.
    """
    cap = 64 << 20
    try:
        cap = int(pltpu.get_tpu_info().vmem_capacity_bytes)
    except Exception:
        pass
    if cap >= (100 << 20):    # v5e / v6e class parts
        return {"feat_tile_target": 16 << 20, "tile_budget": 48 << 20,
                "vmem_limit": 64 << 20}
    return {"feat_tile_target": 8 << 20, "tile_budget": 24 << 20,
            "vmem_limit": 32 << 20}


def _row_unit(itemsize):
    # Rows per packed sublane group: f32 -> 8, bf16 -> 16, int8/fp8 -> 32.
    return max(8, 32 // max(1, itemsize))


def _choose_tile_b(B, D, feat_itemsize, out_itemsize, policy):
    """Return (tile_b, lane_dense).  Byte-based tile sizing, no fixed row cap."""
    feat_row = max(1, D * feat_itemsize)
    out_row = 4 * out_itemsize
    # Budget accounts for 2x feat tile + 2x out tile (double-buffered) plus the
    # resident W^T / bias (tiny, subtracted up front).
    budget = max(1, policy["tile_budget"] - 2 * (D * 4 * feat_itemsize) - 1024)
    rows_by_feat = max(1, policy["feat_tile_target"] // feat_row)
    rows_by_budget = max(1, budget // (2 * (feat_row + out_row)))
    tile = min(B, rows_by_feat, rows_by_budget)

    # Never collapse a large batch onto a single grid step: keep >=4 steps once
    # B is in the thousands so ("parallel",) shards across v7x's 2 TensorCores.
    if B >= 2048:
        tile = min(tile, max(1, B // 4))

    lane_dense = (B >= 256) and (tile >= 128)
    if lane_dense:
        # Lane-dense out block (4, tile_b) requires tile_b % 128 == 0.
        tile = max(128, (min(tile, B) // 128) * 128)
        return tile, True

    unit = _row_unit(feat_itemsize)
    if tile >= B:
        return B, False                    # full-extent block is always legal
    return max(unit, (tile // unit) * unit), False


# ----------------------------------------------------------------------------
# Wrapper
# ----------------------------------------------------------------------------
def pose_predictor_quat(feat, weight, bias, *, tile_b=None):
    """feat: (B, D) f32/bf16, weight: (4, D), bias: (4,) -> (B, 4) in feat.dtype."""
    B, D = feat.shape
    feat_dtype = feat.dtype
    itemsize = jnp.dtype(feat_dtype).itemsize
    policy = _vmem_policy()

    if tile_b is None:
        tile_b, lane_dense = _choose_tile_b(B, D, itemsize, itemsize, policy)
    else:
        lane_dense = (B >= 256) and (tile_b >= 128) and (tile_b % 128 == 0)

    # W^T in the matmul dtype (bf16 feat keeps the dominant HBM read + MXU feed
    # in bf16; differs from PyTorch's f32 Linear by ~bf16 eps).  Bias stays f32
    # for the f32 accumulator.
    w_t = weight.T.astype(feat_dtype)

    grid = (pl.cdiv(B, tile_b),)
    cost = pl.CostEstimate(
        flops=2 * B * D * 4 + 10 * B,                 # matmul + epilogue
        transcendentals=B,                            # one rsqrt per row
        bytes_accessed=B * D * itemsize + D * 4 * itemsize + 4 * 4
        + B * 4 * itemsize,
    )
    cparams = pltpu.CompilerParams(
        dimension_semantics=("parallel",),            # batch axis -> 2 TCs on v7x
        vmem_limit_bytes=policy["vmem_limit"],
    )

    if lane_dense:
        b_col = bias.reshape(4, 1).astype(jnp.float32)
        try:
            out_t = pl.pallas_call(
                _pose_quat_kernel_lane_dense,
                out_shape=jax.ShapeDtypeStruct((4, B), feat_dtype),
                grid_spec=pltpu.PrefetchScalarGridSpec(
                    num_scalar_prefetch=0,
                    grid=grid,
                    in_specs=[
                        pl.BlockSpec((tile_b, D), lambda i: (i, 0)),   # feat tile
                        pl.BlockSpec((D, 4), lambda i: (0, 0)),        # W^T resident
                        pl.BlockSpec((4, 1), lambda i: (0, 0)),        # bias resident
                    ],
                    out_specs=pl.BlockSpec((4, tile_b), lambda i: (0, i)),
                ),
                compiler_params=cparams,
                cost_estimate=cost,
            )(feat, w_t, b_col)
            out_t = jax.block_until_ready(out_t)      # surface any failure here
            # Cheap XLA transpose of (4, B) (B*16 bytes) back to (B, 4).
            return jnp.transpose(out_t)
        except Exception:
            # TODO(synk): if Mosaic cannot lower the in-kernel (TB,4)->(4,TB)
            # relayout on this backend/shape, fall back to the lane-sparse path.
            pass

    b_row = bias.reshape(1, 4).astype(jnp.float32)
    return pl.pallas_call(
        _pose_quat_kernel_rows,
        out_shape=jax.ShapeDtypeStruct((B, 4), feat_dtype),
        grid_spec=pltpu.PrefetchScalarGridSpec(
            num_scalar_prefetch=0,
            grid=grid,
            in_specs=[
                pl.BlockSpec((tile_b, D), lambda i: (i, 0)),           # feat tile
                pl.BlockSpec((D, 4), lambda i: (0, 0)),                # W^T resident
                pl.BlockSpec((1, 4), lambda i: (0, 0)),                # bias resident
            ],
            out_specs=pl.BlockSpec((tile_b, 4), lambda i: (i, 0)),
        ),
        compiler_params=cparams,
        cost_estimate=cost,
    )(feat, w_t, b_row)


# ----------------------------------------------------------------------------
# Reference + tests
# ----------------------------------------------------------------------------
def _reference(feat, weight, bias):
    q = feat.astype(jnp.float32) @ weight.T.astype(jnp.float32) + bias
    n = jnp.maximum(jnp.sqrt(jnp.sum(q * q, axis=-1, keepdims=True)), 1e-12)
    return q / n


def _check(name, feat, weight, bias, **kw):
    out = jax.block_until_ready(pose_predictor_quat(feat, weight, bias, **kw))
    ref = _reference(feat, weight, bias)
    assert out.shape == ref.shape, f"{name}: shape {out.shape} != {ref.shape}"
    err = float(jnp.max(jnp.abs(out.astype(jnp.float32) - ref)))
    assert jnp.allclose(out.astype(jnp.float32), ref, atol=1e-5, rtol=1e-5), (
        f"{name}: max err {err:.3e}")


if __name__ == "__main__":
    key = jax.random.PRNGKey(0)
    k_w, k1, k2, k3, k4, k5 = jax.random.split(key, 6)

    # Parameters mimic init_to_zero_rotation(): weight ~ N(0, 0.02), bias=[1,0,0,0]
    D = 32
    weight = 0.02 * jax.random.normal(k_w, (4, D), dtype=jnp.float32)
    bias = jnp.array([1.0, 0.0, 0.0, 0.0], dtype=jnp.float32)

    # 1) tiny batch -> lane-sparse path, single full-extent block
    _check("small", jax.random.normal(k1, (8, D), dtype=jnp.float32), weight, bias)
    # 2) ragged multi-step grid on the lane-sparse path
    _check("ragged_rows", jax.random.normal(k2, (40, D), dtype=jnp.float32),
           weight, bias, tile_b=16)
    # 3) lane-dense path, 2 grid steps (forced tile, exercises megacore-friendly grid)
    _check("lane_dense", jax.random.normal(k3, (512, D), dtype=jnp.float32),
           weight, bias, tile_b=256)
    # 4) lane-dense path with a ragged tail block (masked OOB writeback)
    _check("lane_dense_ragged", jax.random.normal(k4, (520, D), dtype=jnp.float32),
           weight, bias, tile_b=256)
    # 5) automatic byte-based tile selection (>=4 grid steps once B is large)
    _check("auto_tile", jax.random.normal(k5, (4096, D), dtype=jnp.float32),
           weight, bias)

    print("KERNEL_OK")
</pallas_src>

<mosaic_0001>
module attributes {stable_mosaic.version = 11 : i64} {
  func.func @_pose_quat_kernel_rows(%arg0: i32, %arg1: memref<8x32xf32, #tpu.memory_space<vmem>>, %arg2: memref<32x4xf32, #tpu.memory_space<vmem>>, %arg3: memref<1x4xf32, #tpu.memory_space<vmem>>, %arg4: memref<8x4xf32, #tpu.memory_space<vmem>>) attributes {dimension_semantics = [#tpu.dimension_semantics<parallel>], iteration_bounds = array<i64: 1>, scalar_prefetch = 0 : i64, scratch_operands = 0 : i64, tpu.core_type = #tpu.core_type<tc>, window_params = [{transform_indices = @transform_0, window_bounds = array<i64: 8, 32>}, {pipeline_mode = #tpu.pipeline_mode<synchronous>, transform_indices = @transform_1, window_bounds = array<i64: 32, 4>}, {pipeline_mode = #tpu.pipeline_mode<synchronous>, transform_indices = @transform_2, window_bounds = array<i64: 1, 4>}, {transform_indices = @transform_3, window_bounds = array<i64: 8, 4>}]} {
    %c0 = arith.constant 0 : index
    %c0_0 = arith.constant 0 : index
    %0 = vector.load %arg1[%c0, %c0_0] : memref<8x32xf32, #tpu.memory_space<vmem>>, vector<8x32xf32>
    %c0_1 = arith.constant 0 : index
    %c0_2 = arith.constant 0 : index
    %1 = vector.load %arg2[%c0_1, %c0_2] : memref<32x4xf32, #tpu.memory_space<vmem>>, vector<32x4xf32>
    %c0_3 = arith.constant 0 : index
    %c0_4 = arith.constant 0 : index
    %2 = vector.load %arg3[%c0_3, %c0_4] : memref<1x4xf32, #tpu.memory_space<vmem>>, vector<1x4xf32>
    %cst = arith.constant dense<0.000000e+00> : vector<8x4xf32>
    %3 = tpu.matmul %0, %1, %cst {dimension_numbers = #tpu.dot_dimension_numbers<[1], [0], [0], [1], [0, 0, 1, 1], [], []>} : vector<8x32xf32>, vector<32x4xf32>, vector<8x4xf32> -> vector<8x4xf32>
    %4 = vector.broadcast %2 : vector<1x4xf32> to vector<8x4xf32>
    %5 = arith.addf %3, %4 : vector<8x4xf32>
    %6 = arith.mulf %5, %5 : vector<8x4xf32>
    %cst_5 = arith.constant dense<0.000000e+00> : vector<8xf32>
    %7 = vector.multi_reduction <add>, %6, %cst_5 [1] : vector<8x4xf32> to vector<8xf32>
    %8 = vector.shape_cast %7 : vector<8xf32> to vector<8x1xf32>
    %cst_6 = arith.constant 1.000000e-24 : f32
    %9 = vector.broadcast %cst_6 : f32 to vector<8x1xf32>
    %10 = arith.maximumf %8, %9 : vector<8x1xf32>
    %11 = math.rsqrt %10 : vector<8x1xf32>
    %12 = vector.broadcast %11 : vector<8x1xf32> to vector<8x4xf32>
    %13 = arith.mulf %5, %12 : vector<8x4xf32>
    %c0_7 = arith.constant 0 : index
    %c0_8 = arith.constant 0 : index
    %14 = vector.load %arg4[%c0_7, %c0_8] : memref<8x4xf32, #tpu.memory_space<vmem>>, vector<8x4xf32>
    tpu.vector_store %arg4[%c0_7, %c0_8], %13 {strides = array<i32>} : memref<8x4xf32, #tpu.memory_space<vmem>>, vector<8x4xf32>,
    return
  }
  func.func @transform_0(%arg0: i32) -> (i32, i32) {
    %c0_i32 = arith.constant 0 : i32
    %c0_i32_0 = arith.constant 0 : i32
    return %arg0, %c0_i32 : i32, i32
  }
  func.func @transform_1(%arg0: i32) -> (i32, i32) {
    %c0_i32 = arith.constant 0 : i32
    %c0_i32_0 = arith.constant 0 : i32
    %c0_i32_1 = arith.constant 0 : i32
    return %c0_i32, %c0_i32_0 : i32, i32
  }
  func.func @transform_2(%arg0: i32) -> (i32, i32) {
    %c0_i32 = arith.constant 0 : i32
    %c0_i32_0 = arith.constant 0 : i32
    %c0_i32_1 = arith.constant 0 : i32
    return %c0_i32, %c0_i32_0 : i32, i32
  }
  func.func @transform_3(%arg0: i32) -> (i32, i32) {
    %c0_i32 = arith.constant 0 : i32
    %c0_i32_0 = arith.constant 0 : i32
    return %arg0, %c0_i32 : i32, i32
  }
}

</mosaic_0001>

<bundles_post_ra>
// kernel: tpu_custom_call.1
= control target key start
LH: loop header
LB: loop body
LE: loop exit
PB: predicated region body
PF: predicated region fallthrough
CT: control target
= control target key end

     0   :  { %v135_v0 = vmov 0.0   ;;  %vm136_vm0 = vmmov 0   ;;  %vm26_vm1 = vcmask 261120   ;;  %vm101_vm2 = vcmask 31744   ;;  %s178_s1 = inlined_call_operand.vmem [shape: f32[32,4], index: 1, kind: input, shape index: {}]   ;;  %s179_s0 = inlined_call_operand.vmem [shape: f32[8,32], index: 0, kind: input, shape index: {}]   ;;  %s180_s2 = inlined_call_operand.vmem [shape: f32[1,4], index: 2, kind: input, shape index: {}]   ;;  %s181_s3 = inlined_call_operand.vmem [shape: f32[8,4], index: 3, kind: output, shape index: {}]  }
   0x1   :  { %120 = vmatprep.subr.mxu0 %v135_v0  ;;  %v18_v1 = vld [vmem:[%s178_s1 + $0x18] sm:$0xff]  ;;  %v17_v2 = vld [vmem:[%s178_s1 + $0x10] sm:$0xff]  ;;  %128 = vmatprep.mubr.msk.f32.mxu0 %vm136_vm0, %v135_v0  ;;  %v16_v3 = vld [vmem:[%s178_s1 + $0x8] sm:$0xff] }
   0x2   :  { %121 = vmatpush3.msra.mxu0 %v18_v1  ;;  %v15_v4 = vld [vmem:[%s178_s1] sm:$0xff] }
   0x3   :  { %122 = vmatprep.subr.mxu0 %v135_v0  ;;  %v14_v5 = vld [vmem:[%s179_s0] sm:$0xff] }
   0x4   :  { %123 = vmatpush3.msra.mxu0 %v17_v2  ;;  %v113_v6 = vld [vmem:[%s180_s2] ss:$0 sm:$0xff] }
   0x5   :  { %124 = vmatprep.subr.mxu0 %v135_v0 }
   0x6   :  { %125 = vmatpush3.msra.mxu0 %v16_v3 }
   0x7   :  { %126 = vmatprep.subr.mxu0 %v135_v0 }
   0x8   :  { %127 = vmatpush3.msra.mxu0 %v15_v4 }
   0x9   :  { %129 = vmatmul.mubr.msk.f32.vlgmr.msra.gmra.mxu0 %vm26_vm1, %v14_v5 }
  0xc9   :  { %v96_v7 = vpop.f32.mrf.mxu0 }
  0xca   :  { %v97_v8 = vadd.f32 %v113_v6, %v96_v7 }
  0xcb   :  { %v130_v9 = vpop.f32.mrf.mxu0 }
  0xcc   :  { %v100_v10 = vmul.f32 %v97_v8, %v97_v8 }
  0xce   :  { %v102_v11 = vsel %vm101_vm2, %v100_v10, 0.0 }
  0xcf   :  { %103 = vadd.xlane.f32.xlu0 %v102_v11 }
 0x158   :  { %v104_v12 = vpop.xlane.xlu0 %103 }
 0x159   :  { %v105_v13 = vmax.f32 %v104_v12, 1e-24 }
 0x15b   :  { %133 = vrsqrt.f32 %v105_v13 }
 0x168   :  { %v134_v14 = vpop.eup %133 }
 0x169   :  { %v107_v15 = vmul.f32 %v134_v14, %v97_v8 }
 0x16b   :  { %108 = vst.msk [vmem:[%s181_s3] sm:$0xff] %vm101_vm2, %v107_v15 }

</bundles_post_ra>
